<compile_context>
chip_gen: v5e
topology: v5e:2x2
jax: 0.10.0
libtpu: 0.0.40
codegen_flags: <defaults>
</compile_context>

<pallas_src>
import math

import jax
import jax.numpy as jnp
from jax.experimental import pallas as pl
from jax.experimental.pallas import tpu as pltpu


# ~4 MiB per VMEM buffer: on the measured v6e f32-add sweep, >=1-4 MiB tiles
# sit at the ~85-86% HBM-roofline plateau. 3 buffers (2 in + 1 out), each
# double-buffered by the BlockSpec pipeline -> ~24 MiB peak, which we cover
# with an explicit 40 MiB scoped-VMEM limit (valid on every generation:
# under v7x's 64 MiB physical, and explicitly raised above v5e's 16 MiB
# scoped default).
_PER_BUFFER_CAP = 4 << 20
_VMEM_LIMIT_BYTES = 40 << 20

# Candidate lane widths for the flattened slab (largest first).
_FLAT_WIDTHS = (32768, 16384, 8192, 4096, 2048, 1024, 512, 256, 128)


def _add_kernel(in0_ref, in1_ref, out_ref):
    # Single VPU elementwise add; no reshape/transpose/slicing in the body.
    out_ref[...] = in0_ref[...] + in1_ref[...]


def _sublane_multiple(itemsize: int) -> int:
    """Packed-sublane row multiple: 8 for f32, 16 for bf16, 32 for int8/fp8."""
    return 8 * max(1, 4 // max(1, itemsize))


def _choose_flat_width(n: int, itemsize: int):
    """Largest lane-dense width L (multiple of 128) that divides n and keeps a
    single row under the per-buffer cap. Returns None if n % 128 != 0."""
    for width in _FLAT_WIDTHS:
        if n % width == 0 and width * itemsize <= _PER_BUFFER_CAP:
            return width
    return None


def _choose_row_tile(num_rows: int, row_bytes: int, mult: int) -> int:
    """Byte-driven row tile: biggest tile with buffer <= _PER_BUFFER_CAP,
    rounded to the dtype's packed-sublane multiple. If the whole slab fits in
    one buffer, still split into a few steps so the 'parallel' grid axis can
    shard across v7x's two TensorCores."""
    if num_rows <= mult:
        return num_rows  # full extent (always a legal block shape)

    tile_rows = max(1, _PER_BUFFER_CAP // max(1, row_bytes))
    if tile_rows >= num_rows:
        if num_rows >= 4 * mult:
            steps = 4
        elif num_rows >= 2 * mult:
            steps = 2
        else:
            return num_rows
        tile_rows = -(-num_rows // steps)

    tile_rows = max(mult, (tile_rows // mult) * mult)
    return min(tile_rows, num_rows)


def adder_forward(in0: jax.Array, in1: jax.Array) -> jax.Array:
    """Elementwise in0 + in1 via a pipelined, lane-dense Pallas TPU kernel.

    Accepts arrays of any rank (same shape and dtype). Returns an array of the
    same shape/dtype as the inputs.
    """
    assert in0.shape == in1.shape, "shape mismatch"
    assert in0.dtype == in1.dtype, "dtype mismatch"

    orig_shape = in0.shape
    dtype = in0.dtype
    itemsize = jnp.dtype(dtype).itemsize
    n = math.prod(orig_shape) if orig_shape else 1

    if n == 0:
        return in0 + in1  # empty array: nothing to launch

    mult = _sublane_multiple(itemsize)
    lane_width = _choose_flat_width(n, itemsize)

    if lane_width is not None:
        # Lane-dense flattened slab: (rows, L) with L a large multiple of 128.
        rows = n // lane_width
        a = in0.reshape(rows, lane_width)
        b = in1.reshape(rows, lane_width)
        tile_rows = _choose_row_tile(rows, lane_width * itemsize, mult)
        grid = (pl.cdiv(rows, tile_rows),)
        spec = pl.BlockSpec((tile_rows, lane_width), lambda i: (i, 0))
        flat_shape = (rows, lane_width)
    else:
        # TODO(synk): element counts not divisible by 128 fall back to a single
        # full-extent block (masked partial stores); intended for small ragged
        # shapes only.
        a = in0.reshape(1, n)
        b = in1.reshape(1, n)
        grid = (1,)
        spec = pl.BlockSpec((1, n), lambda i: (0, 0))
        flat_shape = (1, n)

    cost = pl.CostEstimate(
        flops=n,
        transcendentals=0,
        bytes_accessed=3 * n * itemsize,
    )

    out_flat = pl.pallas_call(
        _add_kernel,
        out_shape=jax.ShapeDtypeStruct(flat_shape, dtype),
        grid=grid,
        in_specs=[spec, spec],
        out_specs=spec,
        compiler_params=pltpu.CompilerParams(
            # Row axis is independent work: shards across both TensorCores on
            # v7x, measured-neutral on single-TC v5e/v6e.
            dimension_semantics=("parallel",),
            vmem_limit_bytes=_VMEM_LIT if False else _VMEM_LIMIT_BYTES,
        ),
        cost_estimate=cost,
    )(a, b)

    return out_flat.reshape(orig_shape)


if __name__ == "__main__":
    key = jax.random.PRNGKey(0)
    k0, k1, k2, k3, k4, k5 = jax.random.split(key, 6)

    # 1) Small 4-D f32 inputs (what a module like `adder` would see inline).
    shape = (2, 4, 16, 16)
    a0 = jax.random.normal(k0, shape, dtype=jnp.float32)
    a1 = jax.random.normal(k1, shape, dtype=jnp.float32)
    out = jax.block_until_ready(adder_forward(a0, a1))
    ref = a0 + a1
    assert out.shape == ref.shape and out.dtype == ref.dtype
    assert jnp.array_equal(out, ref), "f32 mismatch vs reference"

    # 2) Narrow-C f32 shape: exercises the lane-dense flatten + multi-step
    #    pipelined grid path (byte-driven tiles, no row cap).
    shape_n = (4096, 128)
    b0 = jax.random.normal(k2, shape_n, dtype=jnp.float32)
    b1 = jax.random.normal(k3, shape_n, dtype=jnp.float32)
    outn = jax.block_until_ready(adder_forward(b0, b1))
    refn = b0 + b1
    assert jnp.array_equal(outn, refn), "narrow-C f32 mismatch vs reference"

    # 3) bf16 inputs: exercises the dtype-aware packed-sublane rounding.
    shape_b = (8, 3, 128)
    c0 = jax.random.normal(k4, shape_b, dtype=jnp.bfloat16)
    c1 = jax.random.normal(k5, shape_b, dtype=jnp.bfloat16)
    outb = jax.block_until_ready(adder_forward(c0, c1))
    refb = c0 + c1
    assert outb.shape == refb.shape and outb.dtype == refb.dtype
    assert jnp.allclose(
        outb.astype(jnp.float32), refb.astype(jnp.float32), atol=1e-2, rtol=1e-2
    ), "bf16 mismatch vs reference"

    print("KERNEL_OK")
</pallas_src>

<mosaic_0001>
module attributes {stable_mosaic.version = 11 : i64} {
  func.func @_add_kernel(%arg0: i32, %arg1: memref<1x2048xf32, #tpu.memory_space<vmem>>, %arg2: memref<1x2048xf32, #tpu.memory_space<vmem>>, %arg3: memref<1x2048xf32, #tpu.memory_space<vmem>>) attributes {dimension_semantics = [#tpu.dimension_semantics<parallel>], iteration_bounds = array<i64: 1>, scalar_prefetch = 0 : i64, scratch_operands = 0 : i64, tpu.core_type = #tpu.core_type<tc>, window_params = [{transform_indices = @transform_0, window_bounds = array<i64: 1, 2048>}, {transform_indices = @transform_1, window_bounds = array<i64: 1, 2048>}, {transform_indices = @transform_2, window_bounds = array<i64: 1, 2048>}]} {
    %c0 = arith.constant 0 : index
    %c0_0 = arith.constant 0 : index
    %0 = vector.load %arg1[%c0, %c0_0] : memref<1x2048xf32, #tpu.memory_space<vmem>>, vector<1x2048xf32>
    %c0_1 = arith.constant 0 : index
    %c0_2 = arith.constant 0 : index
    %1 = vector.load %arg2[%c0_1, %c0_2] : memref<1x2048xf32, #tpu.memory_space<vmem>>, vector<1x2048xf32>
    %2 = arith.addf %0, %1 : vector<1x2048xf32>
    %c0_3 = arith.constant 0 : index
    %c0_4 = arith.constant 0 : index
    %3 = vector.load %arg3[%c0_3, %c0_4] : memref<1x2048xf32, #tpu.memory_space<vmem>>, vector<1x2048xf32>
    tpu.vector_store %arg3[%c0_3, %c0_4], %2 {strides = array<i32>} : memref<1x2048xf32, #tpu.memory_space<vmem>>, vector<1x2048xf32>,
    return
  }
  func.func @transform_0(%arg0: i32) -> (i32, i32) {
    %c0_i32 = arith.constant 0 : i32
    %c0_i32_0 = arith.constant 0 : i32
    return %arg0, %c0_i32 : i32, i32
  }
  func.func @transform_1(%arg0: i32) -> (i32, i32) {
    %c0_i32 = arith.constant 0 : i32
    %c0_i32_0 = arith.constant 0 : i32
    return %arg0, %c0_i32 : i32, i32
  }
  func.func @transform_2(%arg0: i32) -> (i32, i32) {
    %c0_i32 = arith.constant 0 : i32
    %c0_i32_0 = arith.constant 0 : i32
    return %arg0, %c0_i32 : i32, i32
  }
}

</mosaic_0001>

<bundles_post_ra>
// kernel: tpu_custom_call.1
= control target key start
LH: loop header
LB: loop body
LE: loop exit
PB: predicated region body
PF: predicated region fallthrough
CT: control target
= control target key end

     0   :  { %7 = vsyncpa [#allocation3], 0  ;;  %s174_s0 = inlined_call_operand.hbm [shape: f32[1,2048], index: 0, kind: input, shape index: {}]   ;;  %s175_s1 = inlined_call_operand.hbm [shape: f32[1,2048], index: 1, kind: input, shape index: {}]   ;;  %s176_s2 = inlined_call_operand.hbm [shape: f32[1,2048], index: 2, kind: output, shape index: {}]  }
   0x1   :  { %8 = vsyncpa [#allocation6], 0 }
   0x2   :  { %9 = vsyncpa [#allocation4], 0  ;;  %s15_s11 = sshll.u32 %s174_s0, 4  ;;  %s147_s12 = smov [#allocation2]   ;;  %s16_s11 = int_to_ptr.hbm [resolvable:$true] %s15_s11 }
   0x3   :  { %s17_s13 = sshll.u32 %s147_s12, 4  ;;  %s26_s16 = sshll.u32 %s175_s1, 4  ;;  %s18_s13 = int_to_ptr.vmem [resolvable:$true] %s17_s13  ;;  %s27_s16 = int_to_ptr.hbm [resolvable:$true] %s26_s16 }
   0x4   :  { %20 = dma.hbm_to_vmem [thread:$0]  %s16_s11, 256, %s18_s13, [#allocation3]  }
   0x5   :  { %s148_s17 = smov [#allocation5]  }
   0x6   :  { %s28_s18 = sshll.u32 %s148_s17, 4  ;;  %s29_s18 = int_to_ptr.vmem [resolvable:$true] %s28_s18 }
   0x7   :  { %31 = dma.hbm_to_vmem [thread:$0]  %s27_s16, 256, %s29_s18, [#allocation6]  }
   0x8   :  { %141 = dma.done.wait [#allocation3], 256  }
   0x9   :  { %142 = vsyncadd [#allocation3], 4294967040 }
   0xa   :  { %143 = dma.done.wait [#allocation6], 256  }
   0xb   :  { %144 = vsyncadd [#allocation6], 4294967040  ;;  %s149_s19 = smov [#allocation7]   ;;  %s55_s22 = sshll.u32 %s176_s2, 4  ;;  %v40_v0 = vld [vmem:[#allocation2] sm:$0xff]  ;;  %v42_v1 = vld [vmem:[#allocation5] sm:$0xff]  ;;  %s56_s22 = int_to_ptr.hbm [resolvable:$true] %s55_s22 }
   0xc   :  { %s53_s0 = sshll.u32 %s149_s19, 4  ;;  %v41_v2 = vld [vmem:[#allocation2 + $0x8] sm:$0xff]  ;;  %v44_v3 = vadd.f32 %v42_v1, %v40_v0  ;;  %v43_v4 = vld [vmem:[#allocation5 + $0x8] sm:$0xff]  ;;  %s54_s0 = int_to_ptr.vmem [resolvable:$true] %s53_s0 }
   0xd   :  { %v45_v5 = vadd.f32 %v43_v4, %v41_v2 }
   0xe   :  { %46 = vst [vmem:[#allocation7] sm:$0xff] %v44_v3 }
   0xf   :  { %47 = vst [vmem:[#allocation7 + $0x8] sm:$0xff] %v45_v5 }
  0x10   :  { %58 = dma.vmem_to_hbm [thread:$0]  %s54_s0, 256, %s56_s22, [#allocation4]  }
  0x11   :  { %145 = dma.done.wait [#allocation4], 256  }
  0x12   :  { %146 = vsyncadd [#allocation4], 4294967040 }
  0x13   :  { %63 = vsyncpa [#allocation3], 1 }
  0x14   :  { %64 = vsyncpa [#allocation6], 1 }
  0x15   :  { %65 = vsyncpa [#allocation4], 1 }

</bundles_post_ra>
